<compile_context>
chip_gen: v6e
topology: v6e:2x2x1
jax: 0.10.0
libtpu: 0.0.40
codegen_flags: <defaults>
</compile_context>

<pallas_src>
import functools

import jax
import jax.numpy as jnp
from jax.experimental import pallas as pl
from jax.experimental.pallas import tpu as pltpu


def _round_up(n: int, m: int) -> int:
    return ((n + m - 1) // m) * m


def mlp_softmax_kernel(x_ref, w1_ref, b1_ref, w2_ref, b2_ref, o_ref):
    # x_ref:  (TB, D) f32    w1_ref: (D, Hp) bf16   b1_ref: (1, Hp) f32
    # w2_ref: (Hp, Op) bf16  b2_ref: (1, Op) f32    o_ref:  (TB, Op) f32
    #
    # Cast x to bf16 in-kernel (HBM streams the original f32 array directly;
    # no wrapper-side pad/cast copy).
    x = x_ref[...].astype(w1_ref.dtype)

    # fully_connected_layer + ReLU (bias / relu in f32; MXU accumulates f32).
    h = jnp.dot(x, w1_ref[...], preferred_element_type=jnp.float32) + b1_ref[...]
    h = jnp.maximum(h, 0.0)

    # Dropout(p=0.1): identity in eval mode (deterministic forward).
    # TODO(synk): training-mode dropout would use pltpu.prng_seed +
    # pltpu.stateful_bernoulli; cannot match torch RNG bit-exactly.

    # out_layer: bf16 operands, f32 accumulate.  Padded output lanes carry a
    # -1e30 bias (baked into b2) so they receive zero probability mass.
    logits = jnp.dot(h.astype(w2_ref.dtype), w2_ref[...],
                     preferred_element_type=jnp.float32) + b2_ref[...]

    # Numerically stable softmax over the last (lane) axis; reciprocal rides
    # the EUP slot.
    m = jnp.max(logits, axis=-1, keepdims=True)
    e = jnp.exp(logits - m)
    inv = pl.reciprocal(jnp.sum(e, axis=-1, keepdims=True), approx=True)
    o_ref[...] = (e * inv).astype(o_ref.dtype)


def prepare_params(w1, b1, w2, b2, *, compute_dtype=jnp.bfloat16):
    """Transpose / pad / cast torch-layout weights ONCE at model-load time.

    w1: (H, D), b1: (H,), w2: (O, H), b2: (O,)  -- torch nn.Linear layout.
    D (the contraction dim with x) is kept unpadded so x can be streamed
    as-is; only H and O are padded to multiples of 128."""
    H, D = w1.shape
    O = w2.shape[0]
    Hp, Op = _round_up(H, 128), _round_up(O, 128)

    w1_t = jnp.zeros((D, Hp), compute_dtype).at[:, :H].set(
        w1.T.astype(compute_dtype))
    b1_p = jnp.zeros((1, Hp), jnp.float32).at[0, :H].set(b1.astype(jnp.float32))
    w2_t = jnp.zeros((Hp, Op), compute_dtype).at[:H, :O].set(
        w2.T.astype(compute_dtype))
    # Padded output lanes get -1e30 so exp(logit - max) underflows to exactly 0.
    b2_p = jnp.full((1, Op), -1e30, jnp.float32).at[0, :O].set(
        b2.astype(jnp.float32))
    return (w1_t, b1_p, w2_t, b2_p), D, O


def _choose_tb(B: int, D: int, Op: int) -> int:
    """Batch tile size.

    * Budget 24 MiB for the pipelined tiles (double-buffered f32 x + f32 out),
      comfortably under the 32 MiB default scoped VMEM limit on every
      generation (v7x physical is 64 MiB; v5e/v6e have 128 MiB).
    * Aim for >=2 grid steps so v7x megacore ("parallel") shards the batch
      over both TensorCores; cap at 1024 rows (diminishing returns beyond).
    """
    budget = 24 << 20
    per_row = 2 * 4 * (D + Op)                       # 2 buffers x 4 B x row
    vmem_cap = max(8, (budget // per_row) // 8 * 8)
    target = max(8, _round_up(pl.cdiv(B, 2), 8))     # >=2 grid steps
    tb = min(1024, vmem_cap, target)
    if tb >= B:                                      # single full block
        tb = B
    return tb


@functools.partial(jax.jit, static_argnames=("logical_d", "logical_o"))
def cifar_perceptron_forward(x_nchw, params, logical_d, logical_o):
    """x_nchw: (B, C, H, W).  Returns softmax probabilities (B, logical_o)."""
    w1_t, b1_p, w2_t, b2_p = params
    B = x_nchw.shape[0]
    D = x_nchw.shape[1] * x_nchw.shape[2] * x_nchw.shape[3]
    assert D == logical_d
    Hp = w1_t.shape[1]
    Op = w2_t.shape[1]

    # torch.flatten(x, 1): pure reshape, no copy, no pad, no cast.
    x_flat = x_nchw.reshape(B, D)

    TB = _choose_tb(B, D, Op)
    grid = (pl.cdiv(B, TB),)

    const = lambda i: (0, 0)      # weights/biases resident across the B grid

    cost = pl.CostEstimate(
        flops=2 * B * (D * Hp + Hp * Op),
        transcendentals=B * Op,
        bytes_accessed=B * D * 4 + B * Op * 4
        + w1_t.size * 2 + w2_t.size * 2 + (b1_p.size + b2_p.size) * 4,
    )

    out = pl.pallas_call(
        mlp_softmax_kernel,
        out_shape=jax.ShapeDtypeStruct((B, Op), jnp.float32),
        grid=grid,
        in_specs=[
            pl.BlockSpec((TB, D), lambda i: (i, 0)),         # x: tiled over B
            pl.BlockSpec((D, Hp), const),                    # w1: resident
            pl.BlockSpec((1, Hp), const),                    # b1: resident
            pl.BlockSpec((Hp, Op), const),                   # w2: resident
            pl.BlockSpec((1, Op), const),                    # b2: resident
        ],
        out_specs=pl.BlockSpec((TB, Op), lambda i: (i, 0)),  # lane-dense store
        compiler_params=pltpu.CompilerParams(
            dimension_semantics=("parallel",)),              # megacore on v7x
        cost_estimate=cost,
    )(x_flat, w1_t, b1_p, w2_t, b2_p)

    return out[:, :logical_o]


def _init_linear(key, fan_in, fan_out):
    """Deterministic init mimicking torch.nn.Linear (uniform +/-1/sqrt(fan_in))."""
    kw, kb = jax.random.split(key)
    bound = 1.0 / jnp.sqrt(fan_in)
    w = jax.random.uniform(kw, (fan_out, fan_in), jnp.float32, -bound, bound)
    b = jax.random.uniform(kb, (fan_out,), jnp.float32, -bound, bound)
    return w, b


if __name__ == "__main__":
    # Small CIFAR-like shapes: batch=2, channels=4, spatial=16x16.
    B, C, H, W = 2, 4, 16, 16
    input_size = C * H * W          # 1024
    hidden_size = 32
    output_size = 10

    key = jax.random.PRNGKey(0)
    kx, k1, k2 = jax.random.split(key, 3)

    x = jax.random.normal(kx, (B, C, H, W), jnp.float32)
    w1, b1 = _init_linear(k1, input_size, hidden_size)
    w2, b2 = _init_linear(k2, hidden_size, output_size)

    params, D, O = prepare_params(w1, b1, w2, b2)   # one-time model-load prep
    out = cifar_perceptron_forward(x, params, D, O)
    out = jax.block_until_ready(out)

    # Pure-JAX f32 reference (eval-mode dropout = identity).
    x_flat = x.reshape(B, -1)
    h_ref = jnp.maximum(x_flat @ w1.T + b1, 0.0)
    ref = jax.nn.softmax(h_ref @ w2.T + b2, axis=1)

    assert out.shape == (B, output_size)
    assert bool(jnp.all(jnp.isfinite(out)))
    # bf16 matmul operands + approx EUP reciprocal vs. pure-f32 reference.
    assert jnp.allclose(out, ref, atol=1e-2, rtol=1e-2)
    assert jnp.allclose(jnp.sum(out, axis=1), 1.0, atol=1e-2)

    print("KERNEL_OK")
</pallas_src>

<mosaic_0001>
module attributes {stable_mosaic.version = 11 : i64} {
  func.func @mlp_softmax_kernel(%arg0: i32, %arg1: memref<2x1024xf32, #tpu.memory_space<vmem>>, %arg2: memref<1024x128xbf16, #tpu.memory_space<vmem>>, %arg3: memref<1x128xf32, #tpu.memory_space<vmem>>, %arg4: memref<128x128xbf16, #tpu.memory_space<vmem>>, %arg5: memref<1x128xf32, #tpu.memory_space<vmem>>, %arg6: memref<2x128xf32, #tpu.memory_space<vmem>>) attributes {dimension_semantics = [#tpu.dimension_semantics<parallel>], iteration_bounds = array<i64: 1>, scalar_prefetch = 0 : i64, scratch_operands = 0 : i64, tpu.core_type = #tpu.core_type<tc>, window_params = [{transform_indices = @transform_0, window_bounds = array<i64: 2, 1024>}, {pipeline_mode = #tpu.pipeline_mode<synchronous>, transform_indices = @transform_1, window_bounds = array<i64: 1024, 128>}, {pipeline_mode = #tpu.pipeline_mode<synchronous>, transform_indices = @transform_2, window_bounds = array<i64: 1, 128>}, {pipeline_mode = #tpu.pipeline_mode<synchronous>, transform_indices = @transform_3, window_bounds = array<i64: 128, 128>}, {pipeline_mode = #tpu.pipeline_mode<synchronous>, transform_indices = @transform_4, window_bounds = array<i64: 1, 128>}, {transform_indices = @transform_5, window_bounds = array<i64: 2, 128>}]} {
    %c0 = arith.constant 0 : index
    %c0_0 = arith.constant 0 : index
    %0 = vector.load %arg1[%c0, %c0_0] : memref<2x1024xf32, #tpu.memory_space<vmem>>, vector<2x1024xf32>
    %1 = arith.truncf %0 : vector<2x1024xf32> to vector<2x1024xbf16>
    %c0_1 = arith.constant 0 : index
    %c0_2 = arith.constant 0 : index
    %2 = vector.load %arg2[%c0_1, %c0_2] : memref<1024x128xbf16, #tpu.memory_space<vmem>>, vector<1024x128xbf16>
    %cst = arith.constant dense<0.000000e+00> : vector<2x128xf32>
    %3 = tpu.matmul %1, %2, %cst {dimension_numbers = #tpu.dot_dimension_numbers<[1], [0], [0], [1], [0, 0, 1, 1], [], []>} : vector<2x1024xbf16>, vector<1024x128xbf16>, vector<2x128xf32> -> vector<2x128xf32>
    %c0_3 = arith.constant 0 : index
    %c0_4 = arith.constant 0 : index
    %4 = vector.load %arg3[%c0_3, %c0_4] : memref<1x128xf32, #tpu.memory_space<vmem>>, vector<1x128xf32>
    %5 = vector.broadcast %4 : vector<1x128xf32> to vector<2x128xf32>
    %6 = arith.addf %3, %5 : vector<2x128xf32>
    %cst_5 = arith.constant 0.000000e+00 : f32
    %7 = vector.broadcast %cst_5 : f32 to vector<2x128xf32>
    %8 = arith.maximumf %6, %7 : vector<2x128xf32>
    %9 = arith.truncf %8 : vector<2x128xf32> to vector<2x128xbf16>
    %c0_6 = arith.constant 0 : index
    %c0_7 = arith.constant 0 : index
    %10 = vector.load %arg4[%c0_6, %c0_7] : memref<128x128xbf16, #tpu.memory_space<vmem>>, vector<128x128xbf16>
    %cst_8 = arith.constant dense<0.000000e+00> : vector<2x128xf32>
    %11 = tpu.matmul %9, %10, %cst_8 {dimension_numbers = #tpu.dot_dimension_numbers<[1], [0], [0], [1], [0, 0, 1, 1], [], []>} : vector<2x128xbf16>, vector<128x128xbf16>, vector<2x128xf32> -> vector<2x128xf32>
    %c0_9 = arith.constant 0 : index
    %c0_10 = arith.constant 0 : index
    %12 = vector.load %arg5[%c0_9, %c0_10] : memref<1x128xf32, #tpu.memory_space<vmem>>, vector<1x128xf32>
    %13 = vector.broadcast %12 : vector<1x128xf32> to vector<2x128xf32>
    %14 = arith.addf %11, %13 : vector<2x128xf32>
    %cst_11 = arith.constant dense<0xFF800000> : vector<2xf32>
    %15 = vector.multi_reduction <maximumf>, %14, %cst_11 [1] : vector<2x128xf32> to vector<2xf32>
    %16 = vector.shape_cast %15 : vector<2xf32> to vector<2x1xf32>
    %17 = vector.broadcast %16 : vector<2x1xf32> to vector<2x128xf32>
    %18 = arith.subf %14, %17 : vector<2x128xf32>
    %19 = math.exp %18 : vector<2x128xf32>
    %cst_12 = arith.constant dense<0.000000e+00> : vector<2xf32>
    %20 = vector.multi_reduction <add>, %19, %cst_12 [1] : vector<2x128xf32> to vector<2xf32>
    %21 = vector.shape_cast %20 : vector<2xf32> to vector<2x1xf32>
    %22 = tpu.reciprocal %21 {approx = true} : vector<2x1xf32> -> vector<2x1xf32>
    %23 = vector.broadcast %22 : vector<2x1xf32> to vector<2x128xf32>
    %24 = arith.mulf %19, %23 : vector<2x128xf32>
    %c0_13 = arith.constant 0 : index
    %c0_14 = arith.constant 0 : index
    %25 = vector.load %arg6[%c0_13, %c0_14] : memref<2x128xf32, #tpu.memory_space<vmem>>, vector<2x128xf32>
    tpu.vector_store %arg6[%c0_13, %c0_14], %24 {strides = array<i32>} : memref<2x128xf32, #tpu.memory_space<vmem>>, vector<2x128xf32>,
    return
  }
  func.func @transform_0(%arg0: i32) -> (i32, i32) {
    %c0_i32 = arith.constant 0 : i32
    %c0_i32_0 = arith.constant 0 : i32
    return %arg0, %c0_i32 : i32, i32
  }
  func.func @transform_1(%arg0: i32) -> (i32, i32) {
    %c0_i32 = arith.constant 0 : i32
    %c0_i32_0 = arith.constant 0 : i32
    %c0_i32_1 = arith.constant 0 : i32
    return %c0_i32, %c0_i32_0 : i32, i32
  }
  func.func @transform_2(%arg0: i32) -> (i32, i32) {
    %c0_i32 = arith.constant 0 : i32
    %c0_i32_0 = arith.constant 0 : i32
    %c0_i32_1 = arith.constant 0 : i32
    return %c0_i32, %c0_i32_0 : i32, i32
  }
  func.func @transform_3(%arg0: i32) -> (i32, i32) {
    %c0_i32 = arith.constant 0 : i32
    %c0_i32_0 = arith.constant 0 : i32
    %c0_i32_1 = arith.constant 0 : i32
    return %c0_i32, %c0_i32_0 : i32, i32
  }
  func.func @transform_4(%arg0: i32) -> (i32, i32) {
    %c0_i32 = arith.constant 0 : i32
    %c0_i32_0 = arith.constant 0 : i32
    %c0_i32_1 = arith.constant 0 : i32
    return %c0_i32, %c0_i32_0 : i32, i32
  }
  func.func @transform_5(%arg0: i32) -> (i32, i32) {
    %c0_i32 = arith.constant 0 : i32
    %c0_i32_0 = arith.constant 0 : i32
    return %arg0, %c0_i32 : i32, i32
  }
}

</mosaic_0001>

<bundles_post_ra>
// kernel: cifar_perceptron_forward.1
= control target key start
LH: loop header
LB: loop body
LE: loop exit
PB: predicated region body
PF: predicated region fallthrough
CT: control target
= control target key end

     0   :  { %10 = vsyncpa [#allocation3], 0  ;;  %s1315_s0 = inlined_call_operand.vmem [shape: f32[2,1024], index: 0, kind: input, shape index: {}]   ;;  %s1316_s1 = inlined_call_operand.hbm [shape: bf16[1024,128], index: 1, kind: input, shape index: {}]   ;;  %s1317_s2 = inlined_call_operand.vmem [shape: f32[1,128], index: 2, kind: input, shape index: {}]   ;;  %s1318_s3 = inlined_call_operand.vmem [shape: bf16[128,128], index: 3, kind: input, shape index: {}]   ;;  %s1319_s4 = inlined_call_operand.vmem [shape: f32[1,128], index: 4, kind: input, shape index: {}]   ;;  %s1320_s5 = inlined_call_operand.hbm [shape: f32[2,128], index: 5, kind: output, shape index: {}]  }
   0x1   :  { %11 = vsyncpa [#allocation4], 0  ;;  %s1230_s18 = smov [#allocation2]  }
   0x2   :  { %s19_s19 = sshll.u32 %s1230_s18, 4  ;;  %s20_s19 = int_to_ptr.vmem [resolvable:$true] %s19_s19 }
   0x3   :  { %s1194_s20 = scalar_lea.vmem %s20_s19, 8192  ;;  %p1199_p1 = scmp.lt.s32.totalorder %s20_s19, %s20_s19 }
   0x4   :  { %p1195_p0 = scmp.ne.s32.totalorder %s20_s19, %s1194_s20  ;;  %p1200_p2 = scmp.lt.s32.totalorder %s1194_s20, %s1194_s20 }
   0x6   :  { %p1201_p3 = por %p1200_p2, %p1199_p1 }
   0x8   :  { %p1202_p4 = pnand %p1201_p3, %p1195_p0 }
   0xa   :  { %1205 = shalt.err (!%p1202_p4)
}
   0xb   :  { %s1231_s21 = smov 64   ;;  %s1232_s22 = smov 4  }
   0xc   :  { %25 = dma.hbm_to_vmem [thread:$0]  %s1316_s1, 8192, %s20_s19, [#allocation3], %s1231_s21, %s1231_s21, %s1232_s22  }
   0xd   :  { %1226 = dma.done.wait [#allocation3], 8192  }
   0xe   :  { %1227 = vsyncadd [#allocation3], 4294959104  ;;  %v1108_v0 = vld [vmem:[#allocation2 + $0x78] sm:$0xff]   ;;  %v1112_v4 = vld [vmem:[#allocation2 + $0x70] sm:$0xff]   ;;  %v1233_v22 = vmov 1983009808   ;;  %v44_v24 = vlaneseq }
   0xf   :  { %v1109_v1 = vld [vmem:[#allocation2 + $0xf8] sm:$0xff]   ;;  %984 = vmatprep.subr.bf16.mxu0 %v1108_v0  ;;  %v1113_v5 = vld [vmem:[#allocation2 + $0xf0] sm:$0xff]   ;;  %v1116_v8 = vld [vmem:[#allocation2 + $0x68] sm:$0xff]   ;;  %v42_v23 = vunpack.c.l.s4 %v1233_v22  ;;  %vm1235_vm0 = vmmov 0   ;;  %vm882_vm1 = vcmask 1041408   ;;  %s1236_s20 = smov [#allocation5]  }
  0x10   :  { %v1110_v2 = vld [vmem:[#allocation2 + $0x38] sm:$0xff]   ;;  %1006 = vmatprep.subr.bf16.mxu1 %v1109_v1  ;;  %v1114_v6 = vld [vmem:[#allocation2 + $0x30] sm:$0xff]   ;;  %v1117_v9 = vld [vmem:[#allocation2 + $0xe8] sm:$0xff]   ;;  %v45_v30 = vshrl.u32 %v44_v24, 7  ;;  %s901_s21 = sshll.u32 %s1236_s20, 4  ;;  %s902_s21 = int_to_ptr.vmem [resolvable:$true] %s901_s21 }
  0x11   :  { %v1111_v3 = vld [vmem:[#allocation2 + $0xb8] sm:$0xff]   ;;  %985 = vmatpush3.bf16.msra.mxu0 %v1110_v2  ;;  %v1115_v7 = vld [vmem:[#allocation2 + $0xb0] sm:$0xff]   ;;  %v1118_v10 = vld [vmem:[#allocation2 + $0x28] sm:$0xff]   ;;  %v43_v29 = vunpack.c.0.s8 %v42_v23  ;;  %p1211_p6 = scmp.lt.s32.totalorder %s902_s21, %s902_s21 }
  0x12   :  { %1007 = vmatpush3.bf16.msra.mxu1 %v1111_v3  ;;  %986 = vmatprep.subr.bf16.mxu0 %v1112_v4  ;;  %v1119_v11 = vld [vmem:[#allocation2 + $0xa8] sm:$0xff]   ;;  %v1120_v12 = vld [vmem:[#allocation2 + $0x60] sm:$0xff]   ;;  %v1124_v16 = vld [vmem:[#allocation2 + $0x58] sm:$0xff]  }
  0x13   :  { %1008 = vmatprep.subr.bf16.mxu1 %v1113_v5  ;;  %v1121_v13 = vld [vmem:[#allocation2 + $0xe0] sm:$0xff]   ;;  %v1125_v17 = vld [vmem:[#allocation2 + $0xd8] sm:$0xff]   ;;  %v1128_v20 = vld [vmem:[#allocation2 + $0x50] sm:$0xff]   ;;  %v1270_v35 = vsub.s32 %v43_v29, %v45_v30 }
  0x14   :  { %v1122_v14 = vld [vmem:[#allocation2 + $0x20] sm:$0xff]   ;;  %v1126_v18 = vld [vmem:[#allocation2 + $0x18] sm:$0xff]   ;;  %v1129_v21 = vld [vmem:[#allocation2 + $0xd0] sm:$0xff]  }
  0x15   :  { %987 = vmatpush3.bf16.msra.mxu0 %v1114_v6  ;;  %v1123_v15 = vld [vmem:[#allocation2 + $0xa0] sm:$0xff]   ;;  %v1127_v19 = vld [vmem:[#allocation2 + $0x98] sm:$0xff]   ;;  %v1130_v25 = vld [vmem:[#allocation2 + $0x10] sm:$0xff]  }
  0x16   :  { %1009 = vmatpush3.bf16.msra.mxu1 %v1115_v7  ;;  %988 = vmatprep.subr.bf16.mxu0 %v1116_v8  ;;  %v1131_v26 = vld [vmem:[#allocation2 + $0x90] sm:$0xff]   ;;  %v1132_v27 = vld [vmem:[#allocation2 + $0x48] sm:$0xff]   ;;  %v1136_v33 = vld [vmem:[#allocation2 + $0x40] sm:$0xff]  }
  0x17   :  { %1010 = vmatprep.subr.bf16.mxu1 %v1117_v9  ;;  %v1133_v28 = vld [vmem:[#allocation2 + $0xc8] sm:$0xff]   ;;  %v1137_v34 = vld [vmem:[#allocation2 + $0xc0] sm:$0xff]   ;;  %v1141_v41 = vld [vmem:[#allocation2 + $0x178] sm:$0xff]  }
  0x18   :  { %v1134_v31 = vld [vmem:[#allocation2 + $0x8] sm:$0xff]   ;;  %v1138_v36 = vld [vmem:[#allocation2] sm:$0xff]   ;;  %v1142_v42 = vld [vmem:[#allocation2 + $0x1f8] sm:$0xff]  }
  0x19   :  { %989 = vmatpush3.bf16.msra.mxu0 %v1118_v10  ;;  %v1135_v32 = vld [vmem:[#allocation2 + $0x88] sm:$0xff]   ;;  %v1139_v37 = vld [vmem:[#allocation2 + $0x80] sm:$0xff]   ;;  %v1143_v46 = vld [vmem:[#allocation2 + $0x138] sm:$0xff]  }
  0x1a   :  { %1011 = vmatpush3.bf16.msra.mxu1 %v1119_v11  ;;  %990 = vmatprep.subr.bf16.mxu0 %v1120_v12  ;;  %v36_v38 = vld [vmem:[%s1315_s0] sm:$0xff]  ;;  %v1144_v49 = vld [vmem:[#allocation2 + $0x1b8] sm:$0xff]   ;;  %v1145_v51 = vld [vmem:[#allocation2 + $0x170] sm:$0xff]  }
  0x1b   :  { %1012 = vmatprep.subr.bf16.mxu1 %v1121_v13  ;;  %v47_v39 = vrot.slane %v36_v38, %v1270_v35  ;;  %v40_v40 = vcombine.high %v36_v38, %v36_v38  ;;  %v1146_v53 = vld [vmem:[#allocation2 + $0x1f0] sm:$0xff]   ;;  %v1149_v56 = vld [vmem:[#allocation2 + $0x168] sm:$0xff]   ;;  %v1153_v60 = vld [vmem:[#allocation2 + $0x160] sm:$0xff]  }
  0x1c   :  { %v1147_v54 = vld [vmem:[#allocation2 + $0x130] sm:$0xff]   ;;  %v1150_v57 = vld [vmem:[#allocation2 + $0x1e8] sm:$0xff]   ;;  %v1154_v61 = vld [vmem:[#allocation2 + $0x1e0] sm:$0xff]  }
  0x1d   :  { %991 = vmatpush3.bf16.msra.mxu0 %v1122_v14  ;;  %v55_v43 = vcombine.high %v47_v39, %v47_v39  ;;  %v54_v44 = vrot.slane %v40_v40, %v1270_v35  ;;  %v82_v45 = vpack.c.bf16 %v47_v39, %v47_v39  ;;  %v1148_v55 = vld [vmem:[#allocation2 + $0x1b0] sm:$0xff]   ;;  %v1151_v58 = vld [vmem:[#allocation2 + $0x128] sm:$0xff]   ;;  %v1155_v62 = vld [vmem:[#allocation2 + $0x120] sm:$0xff]  }
  0x1e   :  { %1013 = vmatpush3.bf16.msra.mxu1 %v1123_v15  ;;  %992 = vmatprep.subr.bf16.mxu0 %v1124_v16  ;;  %v1152_v59 = vld [vmem:[#allocation2 + $0x1a8] sm:$0xff]   ;;  %v1156_v63 = vld [vmem:[#allocation2 + $0x1a0] sm:$0xff]   ;;  %v1157_v0 = vld [vmem:[#allocation2 + $0x158] sm:$0xff]  }
  0x1f   :  { %1014 = vmatprep.subr.bf16.mxu1 %v1125_v17  ;;  %v83_v47 = vpack.c.bf16 %v55_v43, %v55_v43  ;;  %v56_v48 = vcombine.high %v54_v44, %v54_v44  ;;  %v84_v50 = vpack.c.bf16 %v54_v44, %v54_v44  ;;  %v1158_v1 = vld [vmem:[#allocation2 + $0x1d8] sm:$0xff]   ;;  %v1161_v4 = vld [vmem:[#allocation2 + $0x150] sm:$0xff]   ;;  %v1165_v8 = vld [vmem:[#allocation2 + $0x148] sm:$0xff]  }
  0x20   :  { %v1159_v2 = vld [vmem:[#allocation2 + $0x118] sm:$0xff]   ;;  %v1162_v5 = vld [vmem:[#allocation2 + $0x1d0] sm:$0xff]   ;;  %v1166_v9 = vld [vmem:[#allocation2 + $0x1c8] sm:$0xff]  }
  0x21   :  { %993 = vmatpush3.bf16.msra.mxu0 %v1126_v18  ;;  %641 = vmatprep.mubr.bf16.mxu0 %v83_v47  ;;  %v85_v52 = vpack.c.bf16 %v56_v48, %v56_v48  ;;  %v1160_v3 = vld [vmem:[#allocation2 + $0x198] sm:$0xff]   ;;  %v1163_v6 = vld [vmem:[#allocation2 + $0x110] sm:$0xff]   ;;  %v1167_v10 = vld [vmem:[#allocation2 + $0x108] sm:$0xff]  }
  0x22   :  { %1015 = vmatpush3.bf16.msra.mxu1 %v1127_v19  ;;  %994 = vmatprep.subr.bf16.mxu0 %v1128_v20  ;;  %v1164_v7 = vld [vmem:[#allocation2 + $0x190] sm:$0xff]   ;;  %v1168_v11 = vld [vmem:[#allocation2 + $0x188] sm:$0xff]   ;;  %v1169_v12 = vld [vmem:[#allocation2 + $0x140] sm:$0xff]  }
  0x23   :  { %1016 = vmatprep.subr.bf16.mxu1 %v1129_v21  ;;  %681 = vmatprep.mubr.bf16.mxu1 %v85_v52  ;;  %v1170_v13 = vld [vmem:[#allocation2 + $0x1c0] sm:$0xff]   ;;  %v37_v15 = vld [vmem:[%s1315_s0 + $0x8] sm:$0xff] }
  0x24   :  { %v1171_v14 = vld [vmem:[#allocation2 + $0x100] sm:$0xff]   ;;  %v64_v17 = vrot.slane %v37_v15, %v1270_v35  ;;  %v57_v18 = vcombine.high %v37_v15, %v37_v15  ;;  %v1176_v29 = vld [vmem:[%s1318_s3 + $0x28] sm:$0xff]  }
  0x25   :  { %995 = vmatpush3.bf16.msra.mxu0 %v1130_v25  ;;  %v1172_v16 = vld [vmem:[#allocation2 + $0x180] sm:$0xff]  }
  0x26   :  { %1017 = vmatpush3.bf16.msra.mxu1 %v1131_v26  ;;  %996 = vmatprep.subr.bf16.mxu0 %v1132_v27  ;;  %v72_v19 = vcombine.high %v64_v17, %v64_v17  ;;  %v71_v20 = vrot.slane %v57_v18, %v1270_v35  ;;  %v86_v21 = vpack.c.bf16 %v64_v17, %v64_v17  ;;  %v1174_v26 = vld [vmem:[%s1318_s3 + $0x38] sm:$0xff]   ;;  %v1234_v27 = vmov 0.0   ;;  %v1177_v30 = vld [vmem:[%s1318_s3 + $0x20] sm:$0xff]  }
  0x27   :  { %1018 = vmatprep.subr.bf16.mxu1 %v1133_v28  ;;  %v1175_v28 = vld [vmem:[%s1318_s3 + $0x30] sm:$0xff]   ;;  %v910_v44 = vld [vmem:[%s1317_s2] ss:$0 sm:$0xff] }
  0x28   :  { %v87_v22 = vpack.c.bf16 %v72_v19, %v72_v19  ;;  %v73_v23 = vcombine.high %v71_v20, %v71_v20  ;;  %v88_v24 = vpack.c.bf16 %v71_v20, %v71_v20 }
  0x29   :  { %997 = vmatpush3.bf16.msra.mxu0 %v1134_v31  ;;  %v1178_v31 = vld [vmem:[%s1318_s3 + $0x18] sm:$0xff]  }
  0x2a   :  { %1019 = vmatpush3.bf16.msra.mxu1 %v1135_v32  ;;  %998 = vmatprep.subr.bf16.mxu0 %v1136_v33  ;;  %v89_v25 = vpack.c.bf16 %v73_v23, %v73_v23  ;;  %v1179_v32 = vld [vmem:[%s1318_s3 + $0x10] sm:$0xff]   ;;  %v1180_v33 = vld [vmem:[%s1318_s3 + $0x8] sm:$0xff]  }
  0x2b   :  { %1020 = vmatprep.subr.bf16.mxu1 %v1137_v34  ;;  %v1181_v34 = vld [vmem:[%s1318_s3] sm:$0xff]  }
  0x2d   :  { %999 = vmatpush3.bf16.msra.mxu0 %v1138_v36 }
  0x2e   :  { %1021 = vmatpush3.bf16.msra.mxu1 %v1139_v37  ;;  %1028 = vmatprep.subr.bf16.mxu0 %v1141_v41 }
  0x2f   :  { %1050 = vmatprep.subr.bf16.mxu1 %v1142_v42 }
  0x30   :  { %642 = vmatmul.mubr.bf16.vlgmr.msra.gmra.mxu0 %v82_v45 }
  0x31   :  { %1029 = vmatpush3.bf16.msra.mxu0 %v1143_v46  ;;  %682 = vmatmul.mubr.bf16.vlgmr.msra.gmra.mxu1 %v84_v50 }
  0x32   :  { %1030 = vmatprep.subr.bf16.mxu0 %v1145_v51  ;;  %1051 = vmatpush3.bf16.msra.mxu1 %v1144_v49 }
  0x33   :  { %1052 = vmatprep.subr.bf16.mxu1 %v1146_v53  ;;  %721 = vmatprep.mubr.bf16.mxu0 %v87_v22 }
  0x34   :  { %761 = vmatprep.mubr.bf16.mxu1 %v89_v25 }
  0x35   :  { %1031 = vmatpush3.bf16.msra.mxu0 %v1147_v54 }
  0x36   :  { %1032 = vmatprep.subr.bf16.mxu0 %v1149_v56  ;;  %1053 = vmatpush3.bf16.msra.mxu1 %v1148_v55 }
  0x37   :  { %1054 = vmatprep.subr.bf16.mxu1 %v1150_v57 }
  0x39   :  { %1033 = vmatpush3.bf16.msra.mxu0 %v1151_v58 }
  0x3a   :  { %1034 = vmatprep.subr.bf16.mxu0 %v1153_v60  ;;  %1055 = vmatpush3.bf16.msra.mxu1 %v1152_v59 }
  0x3b   :  { %1056 = vmatprep.subr.bf16.mxu1 %v1154_v61 }
  0x3d   :  { %1035 = vmatpush3.bf16.msra.mxu0 %v1155_v62  ;;  %v975_v62 = vld [vmem:[%s1319_s4] ss:$0 sm:$0xff]  ;;  %s1206_s4 = scalar_lea.vmem %s902_s21, 32 }
  0x3e   :  { %1036 = vmatprep.subr.bf16.mxu0 %v1157_v0  ;;  %1057 = vmatpush3.bf16.msra.mxu1 %v1156_v63  ;;  %p1207_p5 = scmp.ne.s32.totalorder %s902_s21, %s1206_s4  ;;  %p1212_p7 = scmp.lt.s32.totalorder %s1206_s4, %s1206_s4 }
  0x3f   :  { %1058 = vmatprep.subr.bf16.mxu1 %v1158_v1 }
  0x40   :  { %p1213_p8 = por %p1212_p7, %p1211_p6 }
  0x41   :  { %1037 = vmatpush3.bf16.msra.mxu0 %v1159_v2 }
  0x42   :  { %1038 = vmatprep.subr.bf16.mxu0 %v1161_v4  ;;  %1059 = vmatpush3.bf16.msra.mxu1 %v1160_v3  ;;  %p1214_p9 = pnand %p1213_p8, %p1207_p5 }
  0x43   :  { %1060 = vmatprep.subr.bf16.mxu1 %v1162_v5 }
  0x45   :  { %1039 = vmatpush3.bf16.msra.mxu0 %v1163_v6 }
  0x46   :  { %1040 = vmatprep.subr.bf16.mxu0 %v1165_v8  ;;  %1061 = vmatpush3.bf16.msra.mxu1 %v1164_v7 }
  0x47   :  { %1062 = vmatprep.subr.bf16.mxu1 %v1166_v9 }
  0x49   :  { %1041 = vmatpush3.bf16.msra.mxu0 %v1167_v10 }
  0x4a   :  { %1042 = vmatprep.subr.bf16.mxu0 %v1169_v12  ;;  %1063 = vmatpush3.bf16.msra.mxu1 %v1168_v11 }
  0x4b   :  { %1064 = vmatprep.subr.bf16.mxu1 %v1170_v13 }
  0x4d   :  { %1043 = vmatpush3.bf16.msra.mxu0 %v1171_v14 }
  0x4e   :  { %1065 = vmatpush3.bf16.msra.mxu1 %v1172_v16  ;;  %1081 = vmatprep.subr.bf16.mxu0 %v1234_v27 }
  0x50   :  { %722 = vmatmul.mubr.bf16.vlgmr.msra.gmra.mxu0 %v86_v21 }
  0x51   :  { %762 = vmatmul.mubr.bf16.vlgmr.msra.gmra.mxu1 %v88_v24  ;;  %1082 = vmatpush3.bf16.msra.mxu0 %v1174_v26 }
  0x52   :  { %1083 = vmatprep.subr.bf16.mxu0 %v1234_v27  ;;  %1097 = vmatprep.mubr.msk.bf16.mxu0 %vm1235_vm0, %v1234_v27 }
  0x55   :  { %1084 = vmatpush3.bf16.msra.mxu0 %v1175_v28 }
  0x56   :  { %1085 = vmatprep.subr.bf16.mxu0 %v1234_v27 }
  0x59   :  { %1086 = vmatpush3.bf16.msra.mxu0 %v1176_v29 }
  0x5a   :  { %1087 = vmatprep.subr.bf16.mxu0 %v1234_v27 }
  0x5d   :  { %1088 = vmatpush3.bf16.msra.mxu0 %v1177_v30 }
  0x5e   :  { %1089 = vmatprep.subr.bf16.mxu0 %v1234_v27 }
  0x61   :  { %1090 = vmatpush3.bf16.msra.mxu0 %v1178_v31 }
  0x62   :  { %1091 = vmatprep.subr.bf16.mxu0 %v1234_v27 }
  0x65   :  { %1092 = vmatpush3.bf16.msra.mxu0 %v1179_v32 }
  0x66   :  { %1093 = vmatprep.subr.bf16.mxu0 %v1234_v27 }
  0x69   :  { %1094 = vmatpush3.bf16.msra.mxu0 %v1180_v33 }
  0x6a   :  { %1095 = vmatprep.subr.bf16.mxu0 %v1234_v27 }
  0x6d   :  { %1096 = vmatpush3.bf16.msra.mxu0 %v1181_v34 }
  0xf0   :  { %v1000_v35 = vpop.f32.mrf.mxu0 }
  0xf1   :  { %v1022_v36 = vpop.f32.mrf.mxu1 }
  0xf2   :  { %v1001_v37 = vpop.f32.mrf.mxu0 }
  0xf3   :  { %v1023_v38 = vpop.f32.mrf.mxu1  ;;  %v1002_v43 = vadd.f32 %v1001_v37, %v1000_v35 }
  0xf4   :  { %v1003_v39 = vpop.f32.mrf.mxu0  ;;  %v1024_v46 = vadd.f32 %v1023_v38, %v1022_v36 }
  0xf5   :  { %v1025_v40 = vpop.f32.mrf.mxu1  ;;  %v644_v45 = vadd.f32 %v1002_v43, %v910_v44 }
  0xf6   :  { %v1004_v41 = vpop.f32.mrf.mxu0 }
  0xf7   :  { %v1026_v42 = vpop.f32.mrf.mxu1  ;;  %v684_v50 = vadd.f32 %v1024_v46, %v644_v45 }
 0x110   :  { %v1044_v47 = vpop.f32.mrf.mxu0 }
 0x111   :  { %v1066_v48 = vpop.f32.mrf.mxu1 }
 0x112   :  { %v1045_v49 = vpop.f32.mrf.mxu0 }
 0x113   :  { %v1046_v51 = vadd.f32 %v1045_v49, %v1044_v47  ;;  %v1067_v52 = vpop.f32.mrf.mxu1 }
 0x114   :  { %v1047_v53 = vpop.f32.mrf.mxu0  ;;  %v1068_v55 = vadd.f32 %v1067_v52, %v1066_v48 }
 0x115   :  { %v724_v54 = vadd.f32 %v1046_v51, %v684_v50  ;;  %v1069_v56 = vpop.f32.mrf.mxu1 }
 0x116   :  { %v1048_v57 = vpop.f32.mrf.mxu0 }
 0x117   :  { %v764_v58 = vadd.f32 %v1068_v55, %v724_v54  ;;  %v1070_v59 = vpop.f32.mrf.mxu1 }
 0x119   :  { %v769_v60 = vmax.f32 %v764_v58, 0.0 }
 0x11b   :  { %v770_v61 = vpack.c.bf16 %v769_v60, %v769_v60 }
 0x11d   :  { %1098 = vmatmul.mubr.bf16.vlgmr.msra.gmra.mxu0 %v770_v61 }
 0x1dd   :  { %v876_v63 = vpop.f32.mrf.mxu0 }
 0x1de   :  { %v877_v0 = vadd.f32 %v975_v62, %v876_v63 }
 0x1df   :  { %v1099_v1 = vpop.f32.mrf.mxu0 }
 0x1e0   :  { %v883_v2 = vsel %vm882_vm1, %v877_v0, -inf }
 0x1e1   :  { %884 = vmax.xlane.f32.xlu0 %v883_v2  ;;  %v879_v3 = vpop.f32.mrf.mxu0 }
 0x1e3   :  { %v1100_v4 = vpop.f32.mrf.mxu0 }
 0x26a   :  { %v885_v5 = vpop.xlane.xlu0 %884 }
 0x26b   :  { %v886_v6 = vsub.f32 %v877_v0, %v885_v5 }
 0x26d   :  { %v887_v7 = vmul.f32 1.442695, %v886_v6 }
 0x26f   :  { %1182 = vpow2.f32 %v887_v7 }
 0x27c   :  { %v1183_v8 = vpop.eup %1182 }
 0x27d   :  { %v889_v9 = vsel %vm882_vm1, %v1183_v8, 0.0 }
 0x27e   :  { %890 = vadd.xlane.f32.xlu0 %v889_v9 }
 0x307   :  { %v891_v10 = vpop.xlane.xlu0 %890 }
 0x308   :  { %1184 = vrcp.f32 %v891_v10 }
 0x315   :  { %v1185_v11 = vpop.eup %1184 }
 0x316   :  { %v893_v12 = vmul.f32 %v1185_v11, %v1183_v8 }
 0x318   :  { %894 = vst [vmem:[#allocation5] sm:$0x3] %v893_v12 }
 0x319   :  { %1217 = shalt.err (!%p1214_p9)
}
 0x31a   :  { %904 = dma.vmem_to_hbm [thread:$0]  %s902_s21, 32, %s1320_s5, [#allocation4]  }
 0x31b   :  { %1228 = dma.done.wait [#allocation4], 32  }
 0x31c   :  { %1229 = vsyncadd [#allocation4], 4294967264 }
 0x31d   :  { %908 = vsyncpa [#allocation3], 1 }
 0x31e   :  { %909 = vsyncpa [#allocation4], 1 }

</bundles_post_ra>
